<compile_context>
chip_gen: v7x
topology: tpu7x:2x2x1
jax: 0.10.0
libtpu: 0.0.40
codegen_flags: <defaults>
</compile_context>

<pallas_src>
import functools

import jax
import jax.numpy as jnp
from jax.experimental import pallas as pl
from jax.experimental.pallas import tpu as pltpu


def _fused_resblock_kernel(mask_ref, x_ref, w1_ref, b1_ref, w2_ref, b2_ref,
                           *rest, H, W, K, pad, add_residual, use_identity):
    """Fused conv1+bn1+relu+conv2+bn2(+res)+relu for one image.

    mask_ref : (K*K, H*W)  f32 0/1 edge masks for the K*K taps (zero padding)
    x_ref    : (1, Cin, H*W)   channels-first, spatial flattened on lanes
    w*_ref   : (Cout_i, K*K*Cin_i) weight matrices with BN scale pre-folded
    b*_ref   : (Cout_i, 1)         folded conv-bias + BN shift
    out_ref  : (1, Cout, H*W)
    """
    if use_identity:
        id_ref, out_ref = rest
    else:
        (out_ref,) = rest

    HW = H * W

    def conv(inp, w_ref):
        # inp: (C, HW) lane-dense.  Build the 9 taps via lane rolls + masks,
        # one MXU matmul per conv: (Co, K*K*C) @ (K*K*C, HW) -> (Co, HW).
        taps = []
        for dy in range(K):                       # static 3x3 unroll
            for dx in range(K):
                t = dy * K + dx
                off = (dy - pad) * W + (dx - pad)
                src = inp if off == 0 else pltpu.roll(inp, (-off) % HW, axis=1)
                taps.append(src * mask_ref[t:t + 1, :])
        patches = jnp.concatenate(taps, axis=0)   # (K*K*C, HW), lane-dense
        return jnp.dot(w_ref[...], patches,
                       preferred_element_type=jnp.float32)

    x = x_ref[0].astype(jnp.float32)              # (Cin, HW)

    # ---- stage 1: conv1 (BN scale folded) + shift + relu --------------------
    h = conv(x, w1_ref) + b1_ref[...]             # (Cmid, HW) + (Cmid, 1)
    h = jnp.maximum(h, 0.0)

    # ---- stage 2: conv2 + shift (+ residual) + relu -------------------------
    y = conv(h, w2_ref) + b2_ref[...]             # (Cout, HW)
    if add_residual:
        if use_identity:
            y = y + id_ref[0].astype(jnp.float32)
        else:
            y = y + x                              # residual from the same block
    y = jnp.maximum(y, 0.0)

    out_ref[0] = y.astype(out_ref.dtype)          # lane-dense (Cout, HW) store


def _fold_bn(conv_bias, gamma, beta, running_mean, running_var, eps=1e-5):
    """Fold conv bias + inference BatchNorm into per-channel scale/shift."""
    scale = gamma / jnp.sqrt(running_var + eps)
    shift = (conv_bias - running_mean) * scale + beta
    return scale, shift


def resnet_conv2d_forward(x_nchw, params, identity=None, residual=True):
    """Forward matching ResNet_Conv2D(cin=cout, k=3, s=1, bn=['bn'], act='relu')."""
    N, Cin, H, W = x_nchw.shape
    w1 = params["w1"]                       # HWIO (K, K, Cin, Cmid)
    w2 = params["w2"]                       # HWIO (K, K, Cmid, Cout)
    K = w1.shape[0]
    Cmid = w1.shape[-1]
    Cout = w2.shape[-1]
    pad = K // 2
    HW = H * W

    s1, b1 = _fold_bn(params["b1"], params["g1"], params["beta1"],
                      params["rm1"], params["rv1"])
    s2, b2 = _fold_bn(params["b2"], params["g2"], params["beta2"],
                      params["rm2"], params["rv2"])

    # Weight matrices in im2col row order (dy, dx, ci), BN scale folded in.
    w1_eff = (w1.reshape(K * K * Cin, Cmid).T * s1[:, None]).astype(jnp.float32)
    w2_eff = (w2.reshape(K * K * Cmid, Cout).T * s2[:, None]).astype(jnp.float32)

    # Channels-first, spatial flattened on lanes: a free row-major view of NCHW.
    x_flat = x_nchw.reshape(N, Cin, HW)

    # 0/1 edge masks for the K*K taps (zero padding), shared by both convs.
    yy = jnp.arange(HW, dtype=jnp.int32) // W
    xx = jnp.arange(HW, dtype=jnp.int32) % W
    tap_masks = []
    for dy in range(K):
        for dx in range(K):
            ok = ((yy + (dy - pad) >= 0) & (yy + (dy - pad) < H) &
                  (xx + (dx - pad) >= 0) & (xx + (dx - pad) < W))
            tap_masks.append(ok)
    tap_mask = jnp.stack(tap_masks).astype(jnp.float32)     # (K*K, HW)

    use_identity = identity is not None
    add_res = use_identity or (residual and Cin == Cout)

    kernel = functools.partial(_fused_resblock_kernel, H=H, W=W, K=K, pad=pad,
                               add_residual=add_res, use_identity=use_identity)

    in_specs = [
        pl.BlockSpec((K * K, HW), lambda n: (0, 0)),
        pl.BlockSpec((1, Cin, HW), lambda n: (n, 0, 0)),
        pl.BlockSpec((Cmid, K * K * Cin), lambda n: (0, 0)),
        pl.BlockSpec((Cmid, 1), lambda n: (0, 0)),
        pl.BlockSpec((Cout, K * K * Cmid), lambda n: (0, 0)),
        pl.BlockSpec((Cout, 1), lambda n: (0, 0)),
    ]
    args = [tap_mask, x_flat, w1_eff, b1.reshape(Cmid, 1),
            w2_eff, b2.reshape(Cout, 1)]
    if use_identity:
        in_specs.append(pl.BlockSpec((1, Cout, HW), lambda n: (n, 0, 0)))
        args.append(identity.reshape(N, Cout, HW))

    flops = int(2 * N * HW * K * K * (Cin * Cmid + Cmid * Cout)
                + 6 * N * HW * Cout)
    bytes_accessed = int(4 * (N * Cin * HW + N * Cout * HW
                              + w1_eff.size + w2_eff.size + tap_mask.size
                              + Cmid + Cout
                              + (N * Cout * HW if use_identity else 0)))

    y = pl.pallas_call(
        kernel,
        out_shape=jax.ShapeDtypeStruct((N, Cout, HW), x_nchw.dtype),
        grid=(N,),
        in_specs=in_specs,
        out_specs=pl.BlockSpec((1, Cout, HW), lambda n: (n, 0, 0)),
        compiler_params=pltpu.CompilerParams(
            dimension_semantics=("parallel",)),
        cost_estimate=pl.CostEstimate(flops=flops, transcendentals=0,
                                      bytes_accessed=bytes_accessed),
    )(*args)

    return y.reshape(N, Cout, H, W)                 # free row-major reshape


def _xavier_uniform(key, k, cin, cout):
    # torch xavier_uniform_ on OIHW weight: fan_in = cin*k*k, fan_out = cout*k*k
    fan_in = cin * k * k
    fan_out = cout * k * k
    bound = (6.0 / (fan_in + fan_out)) ** 0.5
    w_oihw = jax.random.uniform(key, (cout, cin, k, k), jnp.float32,
                                minval=-bound, maxval=bound)
    return jnp.transpose(w_oihw, (2, 3, 1, 0))      # OIHW -> HWIO


def _reference_forward(x_nchw, params, residual=True, eps=1e-5):
    """Plain-JAX reference (lax.conv, HIGHEST precision) for verification."""
    def conv(x, w_hwio, b):
        w_oihw = jnp.transpose(w_hwio, (3, 2, 0, 1))
        y = jax.lax.conv_general_dilated(
            x, w_oihw, window_strides=(1, 1), padding=((1, 1), (1, 1)),
            dimension_numbers=("NCHW", "OIHW", "NCHW"),
            precision=jax.lax.Precision.HIGHEST)
        return y + b[None, :, None, None]

    def bn(x, g, bt, rm, rv):
        return (x - rm[None, :, None, None]) / jnp.sqrt(rv[None, :, None, None] + eps) \
               * g[None, :, None, None] + bt[None, :, None, None]

    h = jax.nn.relu(bn(conv(x_nchw, params["w1"], params["b1"]),
                       params["g1"], params["beta1"], params["rm1"], params["rv1"]))
    y = bn(conv(h, params["w2"], params["b2"]),
           params["g2"], params["beta2"], params["rm2"], params["rv2"])
    if residual:
        y = y + x_nchw
    return jax.nn.relu(y)


if __name__ == "__main__":
    # Module config: cin = cout = 4, k = 3, s = 1, p = 1, bn=['bn'], act='relu'
    cin = cout = 4
    N, H, W = 2, 16, 16
    K = 3

    key = jax.random.PRNGKey(0)
    kx, kw1, kw2 = jax.random.split(key, 3)

    x = jax.random.normal(kx, (N, cin, H, W), jnp.float32)   # NCHW like PyTorch

    params = {
        "w1": _xavier_uniform(kw1, K, cin, cout),
        "b1": jnp.zeros((cout,), jnp.float32),
        "g1": jnp.ones((cout,), jnp.float32),
        "beta1": jnp.zeros((cout,), jnp.float32),
        "rm1": jnp.zeros((cout,), jnp.float32),
        "rv1": jnp.ones((cout,), jnp.float32),
        "w2": _xavier_uniform(kw2, K, cout, cout),
        "b2": jnp.zeros((cout,), jnp.float32),
        "g2": jnp.ones((cout,), jnp.float32),
        "beta2": jnp.zeros((cout,), jnp.float32),
        "rm2": jnp.zeros((cout,), jnp.float32),
        "rv2": jnp.ones((cout,), jnp.float32),
    }

    fwd = jax.jit(lambda inp: resnet_conv2d_forward(inp, params,
                                                    identity=None, residual=True))
    out = jax.block_until_ready(fwd(x))

    ref = jax.block_until_ready(_reference_forward(x, params, residual=True))

    assert out.shape == (N, cout, H, W), out.shape
    assert jnp.all(jnp.isfinite(out))
    assert jnp.allclose(out, ref, atol=1e-4, rtol=1e-4), \
        float(jnp.max(jnp.abs(out - ref)))

    print("KERNEL_OK")
</pallas_src>

<mosaic_0001>
module attributes {stable_mosaic.version = 11 : i64} {
  func.func @_fused_resblock_kernel(%arg0: i32, %arg1: memref<9x256xf32, #tpu.memory_space<vmem>>, %arg2: memref<1x4x256xf32, #tpu.memory_space<vmem>>, %arg3: memref<4x36xf32, #tpu.memory_space<vmem>>, %arg4: memref<4x1xf32, #tpu.memory_space<vmem>>, %arg5: memref<4x36xf32, #tpu.memory_space<vmem>>, %arg6: memref<4x1xf32, #tpu.memory_space<vmem>>, %arg7: memref<1x4x256xf32, #tpu.memory_space<vmem>>) attributes {dimension_semantics = [#tpu.dimension_semantics<parallel>], iteration_bounds = array<i64: 2>, scalar_prefetch = 0 : i64, scratch_operands = 0 : i64, tpu.core_type = #tpu.core_type<tc>, window_params = [{pipeline_mode = #tpu.pipeline_mode<synchronous>, transform_indices = @transform_0, window_bounds = array<i64: 9, 256>}, {transform_indices = @transform_1, window_bounds = array<i64: 1, 4, 256>}, {pipeline_mode = #tpu.pipeline_mode<synchronous>, transform_indices = @transform_2, window_bounds = array<i64: 4, 36>}, {pipeline_mode = #tpu.pipeline_mode<synchronous>, transform_indices = @transform_3, window_bounds = array<i64: 4, 1>}, {pipeline_mode = #tpu.pipeline_mode<synchronous>, transform_indices = @transform_4, window_bounds = array<i64: 4, 36>}, {pipeline_mode = #tpu.pipeline_mode<synchronous>, transform_indices = @transform_5, window_bounds = array<i64: 4, 1>}, {transform_indices = @transform_6, window_bounds = array<i64: 1, 4, 256>}]} {
    %c0 = arith.constant 0 : index
    %c0_0 = arith.constant 0 : index
    %c0_1 = arith.constant 0 : index
    %0 = vector.load %arg2[%c0, %c0_0, %c0_1] : memref<1x4x256xf32, #tpu.memory_space<vmem>>, vector<1x4x256xf32>
    %1 = vector.shape_cast %0 : vector<1x4x256xf32> to vector<4x256xf32>
    %c17_i32 = arith.constant 17 : i32
    %2 = tpu.dynamic_rotate %1 by %c17_i32 dim 1 : vector<4x256xf32>, i32 -> vector<4x256xf32>
    %c0_2 = arith.constant 0 : index
    %c0_3 = arith.constant 0 : index
    %3 = vector.load %arg1[%c0_2, %c0_3] : memref<9x256xf32, #tpu.memory_space<vmem>>, vector<1x256xf32>
    %4 = vector.broadcast %3 : vector<1x256xf32> to vector<4x256xf32>
    %5 = arith.mulf %2, %4 : vector<4x256xf32>
    %c16_i32 = arith.constant 16 : i32
    %6 = tpu.dynamic_rotate %1 by %c16_i32 dim 1 : vector<4x256xf32>, i32 -> vector<4x256xf32>
    %c1 = arith.constant 1 : index
    %c0_4 = arith.constant 0 : index
    %7 = vector.load %arg1[%c1, %c0_4] : memref<9x256xf32, #tpu.memory_space<vmem>>, vector<1x256xf32>
    %8 = vector.broadcast %7 : vector<1x256xf32> to vector<4x256xf32>
    %9 = arith.mulf %6, %8 : vector<4x256xf32>
    %c15_i32 = arith.constant 15 : i32
    %10 = tpu.dynamic_rotate %1 by %c15_i32 dim 1 : vector<4x256xf32>, i32 -> vector<4x256xf32>
    %c2 = arith.constant 2 : index
    %c0_5 = arith.constant 0 : index
    %11 = vector.load %arg1[%c2, %c0_5] : memref<9x256xf32, #tpu.memory_space<vmem>>, vector<1x256xf32>
    %12 = vector.broadcast %11 : vector<1x256xf32> to vector<4x256xf32>
    %13 = arith.mulf %10, %12 : vector<4x256xf32>
    %c1_i32 = arith.constant 1 : i32
    %14 = tpu.dynamic_rotate %1 by %c1_i32 dim 1 : vector<4x256xf32>, i32 -> vector<4x256xf32>
    %c3 = arith.constant 3 : index
    %c0_6 = arith.constant 0 : index
    %15 = vector.load %arg1[%c3, %c0_6] : memref<9x256xf32, #tpu.memory_space<vmem>>, vector<1x256xf32>
    %16 = vector.broadcast %15 : vector<1x256xf32> to vector<4x256xf32>
    %17 = arith.mulf %14, %16 : vector<4x256xf32>
    %c4 = arith.constant 4 : index
    %c0_7 = arith.constant 0 : index
    %18 = vector.load %arg1[%c4, %c0_7] : memref<9x256xf32, #tpu.memory_space<vmem>>, vector<1x256xf32>
    %19 = vector.broadcast %18 : vector<1x256xf32> to vector<4x256xf32>
    %20 = arith.mulf %1, %19 : vector<4x256xf32>
    %c255_i32 = arith.constant 255 : i32
    %21 = tpu.dynamic_rotate %1 by %c255_i32 dim 1 : vector<4x256xf32>, i32 -> vector<4x256xf32>
    %c5 = arith.constant 5 : index
    %c0_8 = arith.constant 0 : index
    %22 = vector.load %arg1[%c5, %c0_8] : memref<9x256xf32, #tpu.memory_space<vmem>>, vector<1x256xf32>
    %23 = vector.broadcast %22 : vector<1x256xf32> to vector<4x256xf32>
    %24 = arith.mulf %21, %23 : vector<4x256xf32>
    %c241_i32 = arith.constant 241 : i32
    %25 = tpu.dynamic_rotate %1 by %c241_i32 dim 1 : vector<4x256xf32>, i32 -> vector<4x256xf32>
    %c6 = arith.constant 6 : index
    %c0_9 = arith.constant 0 : index
    %26 = vector.load %arg1[%c6, %c0_9] : memref<9x256xf32, #tpu.memory_space<vmem>>, vector<1x256xf32>
    %27 = vector.broadcast %26 : vector<1x256xf32> to vector<4x256xf32>
    %28 = arith.mulf %25, %27 : vector<4x256xf32>
    %c240_i32 = arith.constant 240 : i32
    %29 = tpu.dynamic_rotate %1 by %c240_i32 dim 1 : vector<4x256xf32>, i32 -> vector<4x256xf32>
    %c7 = arith.constant 7 : index
    %c0_10 = arith.constant 0 : index
    %30 = vector.load %arg1[%c7, %c0_10] : memref<9x256xf32, #tpu.memory_space<vmem>>, vector<1x256xf32>
    %31 = vector.broadcast %30 : vector<1x256xf32> to vector<4x256xf32>
    %32 = arith.mulf %29, %31 : vector<4x256xf32>
    %c239_i32 = arith.constant 239 : i32
    %33 = tpu.dynamic_rotate %1 by %c239_i32 dim 1 : vector<4x256xf32>, i32 -> vector<4x256xf32>
    %c8 = arith.constant 8 : index
    %c0_11 = arith.constant 0 : index
    %34 = vector.load %arg1[%c8, %c0_11] : memref<9x256xf32, #tpu.memory_space<vmem>>, vector<1x256xf32>
    %35 = vector.broadcast %34 : vector<1x256xf32> to vector<4x256xf32>
    %36 = arith.mulf %33, %35 : vector<4x256xf32>
    %37 = tpu.concatenate %5, %9, %13, %17, %20, %24, %28, %32, %36 in 0 : vector<4x256xf32>, vector<4x256xf32>, vector<4x256xf32>, vector<4x256xf32>, vector<4x256xf32>, vector<4x256xf32>, vector<4x256xf32>, vector<4x256xf32>, vector<4x256xf32> -> vector<36x256xf32>
    %c0_12 = arith.constant 0 : index
    %c0_13 = arith.constant 0 : index
    %38 = vector.load %arg3[%c0_12, %c0_13] : memref<4x36xf32, #tpu.memory_space<vmem>>, vector<4x36xf32>
    %cst = arith.constant dense<0.000000e+00> : vector<4x256xf32>
    %39 = tpu.matmul %38, %37, %cst {dimension_numbers = #tpu.dot_dimension_numbers<[1], [0], [0], [1], [0, 0, 1, 1], [], []>} : vector<4x36xf32>, vector<36x256xf32>, vector<4x256xf32> -> vector<4x256xf32>
    %c0_14 = arith.constant 0 : index
    %c0_15 = arith.constant 0 : index
    %40 = vector.load %arg4[%c0_14, %c0_15] : memref<4x1xf32, #tpu.memory_space<vmem>>, vector<4x1xf32>
    %41 = vector.broadcast %40 : vector<4x1xf32> to vector<4x256xf32>
    %42 = arith.addf %39, %41 : vector<4x256xf32>
    %cst_16 = arith.constant 0.000000e+00 : f32
    %43 = vector.broadcast %cst_16 : f32 to vector<4x256xf32>
    %44 = arith.maximumf %42, %43 : vector<4x256xf32>
    %c17_i32_17 = arith.constant 17 : i32
    %45 = tpu.dynamic_rotate %44 by %c17_i32_17 dim 1 : vector<4x256xf32>, i32 -> vector<4x256xf32>
    %c0_18 = arith.constant 0 : index
    %c0_19 = arith.constant 0 : index
    %46 = vector.load %arg1[%c0_18, %c0_19] : memref<9x256xf32, #tpu.memory_space<vmem>>, vector<1x256xf32>
    %47 = vector.broadcast %46 : vector<1x256xf32> to vector<4x256xf32>
    %48 = arith.mulf %45, %47 : vector<4x256xf32>
    %c16_i32_20 = arith.constant 16 : i32
    %49 = tpu.dynamic_rotate %44 by %c16_i32_20 dim 1 : vector<4x256xf32>, i32 -> vector<4x256xf32>
    %c1_21 = arith.constant 1 : index
    %c0_22 = arith.constant 0 : index
    %50 = vector.load %arg1[%c1_21, %c0_22] : memref<9x256xf32, #tpu.memory_space<vmem>>, vector<1x256xf32>
    %51 = vector.broadcast %50 : vector<1x256xf32> to vector<4x256xf32>
    %52 = arith.mulf %49, %51 : vector<4x256xf32>
    %c15_i32_23 = arith.constant 15 : i32
    %53 = tpu.dynamic_rotate %44 by %c15_i32_23 dim 1 : vector<4x256xf32>, i32 -> vector<4x256xf32>
    %c2_24 = arith.constant 2 : index
    %c0_25 = arith.constant 0 : index
    %54 = vector.load %arg1[%c2_24, %c0_25] : memref<9x256xf32, #tpu.memory_space<vmem>>, vector<1x256xf32>
    %55 = vector.broadcast %54 : vector<1x256xf32> to vector<4x256xf32>
    %56 = arith.mulf %53, %55 : vector<4x256xf32>
    %c1_i32_26 = arith.constant 1 : i32
    %57 = tpu.dynamic_rotate %44 by %c1_i32_26 dim 1 : vector<4x256xf32>, i32 -> vector<4x256xf32>
    %c3_27 = arith.constant 3 : index
    %c0_28 = arith.constant 0 : index
    %58 = vector.load %arg1[%c3_27, %c0_28] : memref<9x256xf32, #tpu.memory_space<vmem>>, vector<1x256xf32>
    %59 = vector.broadcast %58 : vector<1x256xf32> to vector<4x256xf32>
    %60 = arith.mulf %57, %59 : vector<4x256xf32>
    %c4_29 = arith.constant 4 : index
    %c0_30 = arith.constant 0 : index
    %61 = vector.load %arg1[%c4_29, %c0_30] : memref<9x256xf32, #tpu.memory_space<vmem>>, vector<1x256xf32>
    %62 = vector.broadcast %61 : vector<1x256xf32> to vector<4x256xf32>
    %63 = arith.mulf %44, %62 : vector<4x256xf32>
    %c255_i32_31 = arith.constant 255 : i32
    %64 = tpu.dynamic_rotate %44 by %c255_i32_31 dim 1 : vector<4x256xf32>, i32 -> vector<4x256xf32>
    %c5_32 = arith.constant 5 : index
    %c0_33 = arith.constant 0 : index
    %65 = vector.load %arg1[%c5_32, %c0_33] : memref<9x256xf32, #tpu.memory_space<vmem>>, vector<1x256xf32>
    %66 = vector.broadcast %65 : vector<1x256xf32> to vector<4x256xf32>
    %67 = arith.mulf %64, %66 : vector<4x256xf32>
    %c241_i32_34 = arith.constant 241 : i32
    %68 = tpu.dynamic_rotate %44 by %c241_i32_34 dim 1 : vector<4x256xf32>, i32 -> vector<4x256xf32>
    %c6_35 = arith.constant 6 : index
    %c0_36 = arith.constant 0 : index
    %69 = vector.load %arg1[%c6_35, %c0_36] : memref<9x256xf32, #tpu.memory_space<vmem>>, vector<1x256xf32>
    %70 = vector.broadcast %69 : vector<1x256xf32> to vector<4x256xf32>
    %71 = arith.mulf %68, %70 : vector<4x256xf32>
    %c240_i32_37 = arith.constant 240 : i32
    %72 = tpu.dynamic_rotate %44 by %c240_i32_37 dim 1 : vector<4x256xf32>, i32 -> vector<4x256xf32>
    %c7_38 = arith.constant 7 : index
    %c0_39 = arith.constant 0 : index
    %73 = vector.load %arg1[%c7_38, %c0_39] : memref<9x256xf32, #tpu.memory_space<vmem>>, vector<1x256xf32>
    %74 = vector.broadcast %73 : vector<1x256xf32> to vector<4x256xf32>
    %75 = arith.mulf %72, %74 : vector<4x256xf32>
    %c239_i32_40 = arith.constant 239 : i32
    %76 = tpu.dynamic_rotate %44 by %c239_i32_40 dim 1 : vector<4x256xf32>, i32 -> vector<4x256xf32>
    %c8_41 = arith.constant 8 : index
    %c0_42 = arith.constant 0 : index
    %77 = vector.load %arg1[%c8_41, %c0_42] : memref<9x256xf32, #tpu.memory_space<vmem>>, vector<1x256xf32>
    %78 = vector.broadcast %77 : vector<1x256xf32> to vector<4x256xf32>
    %79 = arith.mulf %76, %78 : vector<4x256xf32>
    %80 = tpu.concatenate %48, %52, %56, %60, %63, %67, %71, %75, %79 in 0 : vector<4x256xf32>, vector<4x256xf32>, vector<4x256xf32>, vector<4x256xf32>, vector<4x256xf32>, vector<4x256xf32>, vector<4x256xf32>, vector<4x256xf32>, vector<4x256xf32> -> vector<36x256xf32>
    %c0_43 = arith.constant 0 : index
    %c0_44 = arith.constant 0 : index
    %81 = vector.load %arg5[%c0_43, %c0_44] : memref<4x36xf32, #tpu.memory_space<vmem>>, vector<4x36xf32>
    %cst_45 = arith.constant dense<0.000000e+00> : vector<4x256xf32>
    %82 = tpu.matmul %81, %80, %cst_45 {dimension_numbers = #tpu.dot_dimension_numbers<[1], [0], [0], [1], [0, 0, 1, 1], [], []>} : vector<4x36xf32>, vector<36x256xf32>, vector<4x256xf32> -> vector<4x256xf32>
    %c0_46 = arith.constant 0 : index
    %c0_47 = arith.constant 0 : index
    %83 = vector.load %arg6[%c0_46, %c0_47] : memref<4x1xf32, #tpu.memory_space<vmem>>, vector<4x1xf32>
    %84 = vector.broadcast %83 : vector<4x1xf32> to vector<4x256xf32>
    %85 = arith.addf %82, %84 : vector<4x256xf32>
    %86 = arith.addf %85, %1 : vector<4x256xf32>
    %cst_48 = arith.constant 0.000000e+00 : f32
    %87 = vector.broadcast %cst_48 : f32 to vector<4x256xf32>
    %88 = arith.maximumf %86, %87 : vector<4x256xf32>
    %c0_49 = arith.constant 0 : index
    %c0_50 = arith.constant 0 : index
    %c0_51 = arith.constant 0 : index
    %89 = vector.load %arg7[%c0_49, %c0_50, %c0_51] : memref<1x4x256xf32, #tpu.memory_space<vmem>>, vector<1x4x256xf32>
    %90 = vector.shape_cast %89 : vector<1x4x256xf32> to vector<4x256xf32>
    %91 = vector.shape_cast %88 : vector<4x256xf32> to vector<1x4x256xf32>
    tpu.vector_store %arg7[%c0_49, %c0_50, %c0_51], %91 {strides = array<i32>} : memref<1x4x256xf32, #tpu.memory_space<vmem>>, vector<1x4x256xf32>,
    return
  }
  func.func @transform_0(%arg0: i32) -> (i32, i32) {
    %c0_i32 = arith.constant 0 : i32
    %c0_i32_0 = arith.constant 0 : i32
    %c0_i32_1 = arith.constant 0 : i32
    return %c0_i32, %c0_i32_0 : i32, i32
  }
  func.func @transform_1(%arg0: i32) -> (i32, i32, i32) {
    %c0_i32 = arith.constant 0 : i32
    %c0_i32_0 = arith.constant 0 : i32
    %c0_i32_1 = arith.constant 0 : i32
    return %arg0, %c0_i32, %c0_i32_0 : i32, i32, i32
  }
  func.func @transform_2(%arg0: i32) -> (i32, i32) {
    %c0_i32 = arith.constant 0 : i32
    %c0_i32_0 = arith.constant 0 : i32
    %c0_i32_1 = arith.constant 0 : i32
    return %c0_i32, %c0_i32_0 : i32, i32
  }
  func.func @transform_3(%arg0: i32) -> (i32, i32) {
    %c0_i32 = arith.constant 0 : i32
    %c0_i32_0 = arith.constant 0 : i32
    %c0_i32_1 = arith.constant 0 : i32
    return %c0_i32, %c0_i32_0 : i32, i32
  }
  func.func @transform_4(%arg0: i32) -> (i32, i32) {
    %c0_i32 = arith.constant 0 : i32
    %c0_i32_0 = arith.constant 0 : i32
    %c0_i32_1 = arith.constant 0 : i32
    return %c0_i32, %c0_i32_0 : i32, i32
  }
  func.func @transform_5(%arg0: i32) -> (i32, i32) {
    %c0_i32 = arith.constant 0 : i32
    %c0_i32_0 = arith.constant 0 : i32
    %c0_i32_1 = arith.constant 0 : i32
    return %c0_i32, %c0_i32_0 : i32, i32
  }
  func.func @transform_6(%arg0: i32) -> (i32, i32, i32) {
    %c0_i32 = arith.constant 0 : i32
    %c0_i32_0 = arith.constant 0 : i32
    %c0_i32_1 = arith.constant 0 : i32
    return %arg0, %c0_i32, %c0_i32_0 : i32, i32, i32
  }
}

</mosaic_0001>

<bundles_post_ra>
// kernel: _lambda_.1
= control target key start
LH: loop header
LB: loop body
LE: loop exit
PB: predicated region body
PF: predicated region fallthrough
CT: control target
= control target key end

     0   :  { %s940_s21 = smov 0   ;;  %s1272_s0 = inlined_call_operand.vmem [shape: f32[9,256], index: 0, kind: input, shape index: {}]   ;;  %s1273_s1 = inlined_call_operand.vmem [shape: f32[2,4,256], index: 1, kind: input, shape index: {}]   ;;  %s1274_s2 = inlined_call_operand.vmem [shape: f32[4,36], index: 2, kind: input, shape index: {}]   ;;  %s1275_s3 = inlined_call_operand.vmem [shape: f32[4,1], index: 3, kind: input, shape index: {}, may-alias: {3,5}]   ;;  %s1276_s4 = inlined_call_operand.vmem [shape: f32[4,36], index: 4, kind: input, shape index: {}]   ;;  %s1277_s5 = inlined_call_operand.vmem [shape: f32[4,1], index: 5, kind: input, shape index: {}, may-alias: {3,5}]   ;;  %s1278_s6 = inlined_call_operand.vmem [shape: f32[2,4,256], index: 6, kind: output, shape index: {}]  }
   0x1 LB: > { %s824_s22 = sadd.s32 4294967295, %s893_s21   ;;  %p828_p0 = scmp.ge.s32.totalorder %s893_s21, 1  ;;  %s893_s21 = sphi %s940_s21, %s16_s21  }
   0x2   : > { %p212_p1 = scmp.lt.s32.totalorder %s893_s21, 3 }
   0x4   : > { %p213_p2 = pnand %p828_p0, %p212_p1 }
   0x5   : > { %p242_p3 = scmp.lt.s32.totalorder (!%p213_p2), %s824_s22, 1  ;;  %s895_s27 = smov (!%p213_p2), 1   ;;  %v901_v2 = vmov (!%p213_p2), 0.0   ;;  %v903_v3 = vmov (!%p213_p2), 0   ;;  %v486_v4 = vld [vmem:[%s1275_s3] sm:$0xf] (!%p213_p2)  ;;  %v260_v5 = vlaneseq (!%p213_p2) }
   0x6   : > { %216 = sbr.rel (%p213_p2) target bundleno = 761 (0x2f9), region = 44  ;;  %s896_s28 = smov (!%p213_p2), 16   ;;  %566 = vmatprep.mubr.f32.mxu0 (!%p213_p2), %v901_v2  ;;  %753 = vmatprep.mubr.f32.mxu1 (!%p213_p2), %v901_v2  ;;  %v835_v12 = vld [vmem:[%s1272_s0 + $0x3] ss:$8 sm:$0x3] (!%p213_p2)  ;;  %vm476_vm4 = vcmask (!%p213_p2), 1043456  }
   0x7   : > { %s897_s29 = smov (!%p213_p2), 17   ;;  %s898_s30 = smov (!%p213_p2), 15   ;;  %885 = vset.pattern.permute.xlu0 (!%p213_p2), %v903_v3  ;;  %v268_v6 = vshrl.u32 (!%p213_p2), %v260_v5, 7  ;;  %v997_v7 = vand.u32 (!%p213_p2), 127, %v260_v5  ;;  %vm492_vm9 = vcmask (!%p213_p2), 293888  }
   0x8   : > { %s899_s7 = smov (!%p213_p2), 127   ;;  %s900_s8 = smov (!%p213_p2), 112   ;;  %v833_v13 = vld [vmem:[%s1272_s0 + $0x1] ss:$8 sm:$0x3] (!%p213_p2) }
   0x9   : > { %s902_s9 = smov (!%p213_p2), 113   ;;  %s904_s10 = smov (!%p213_p2), 111   ;;  %v999_v10 = vsub.s32 (!%p213_p2), 0, %v268_v6  ;;  %v1001_v11 = vsub.s32 (!%p213_p2), 1, %v268_v6  ;;  %vm327_vm0 = vcmp.lt.s32.totalorder (!%p213_p2), %v997_v7, 1  ;;  %vm283_vm1 = vcmp.lt.s32.totalorder (!%p213_p2), %v997_v7, 16 }
   0xa   : > { %v265_v18 = vld [vmem:[%s1272_s0] ss:$8 sm:$0x3] (!%p213_p2)  ;;  %vm262_vm2 = vcmp.lt.s32.totalorder (!%p213_p2), %v997_v7, 17  ;;  %vm305_vm3 = vcmp.lt.s32.totalorder (!%p213_p2), %v997_v7, 15  ;;  %vm365_vm5 = vcmp.lt.s32.totalorder (!%p213_p2), %v997_v7, 127 }
   0xb   : > { %v1011_v16 = vrot.slane (!%p213_p2), %v835_v12, %v999_v10  ;;  %v1014_v17 = vrot.slane (!%p213_p2), %v835_v12, %v1001_v11  ;;  %v1025_v21 = vrot.slane (!%p213_p2), %v833_v13, %v999_v10  ;;  %v1028_v22 = vrot.slane (!%p213_p2), %v833_v13, %v1001_v11  ;;  %v834_v23 = vld [vmem:[%s1272_s0 + $0x2] ss:$8 sm:$0x3] (!%p213_p2)  ;;  %v836_v28 = vld [vmem:[%s1272_s0 + $0x4] ss:$8 sm:$0x3] (!%p213_p2) }
   0xc   : > { %v1035_v24 = vrot.slane (!%p213_p2), %v265_v18, %v999_v10  ;;  %v1038_v25 = vrot.slane (!%p213_p2), %v265_v18, %v1001_v11  ;;  %v1053_v35 = vrot.slane (!%p213_p2), %v834_v23, %v999_v10  ;;  %v1056_v36 = vrot.slane (!%p213_p2), %v834_v23, %v1001_v11  ;;  %v837_v45 = vld [vmem:[%s1272_s0 + $0x5] ss:$8 sm:$0x3] (!%p213_p2)  ;;  %v839_v56 = vld [vmem:[%s1272_s0 + $0x7] ss:$8 sm:$0x3] (!%p213_p2) }
   0xd   : > { %s1280_s22 = smov (!%p242_p3, %s824_s22), 1  ;;  %v1063_v39 = vrot.slane %v836_v28, %v999_v10  ;;  %v1066_v40 = vrot.slane %v836_v28, %v1001_v11  ;;  %v1081_v54 = vrot.slane %v837_v45, %v999_v10  ;;  %v1084_v55 = vrot.slane %v837_v45, %v1001_v11 }
   0xe   : > { %s849_s23 = sshll.u32 %s1280_s22, 3  ;;  %vm409_vm6 = vcmp.lt.s32.totalorder %v997_v7, 112  ;;  %v1101_v6 = vrot.slane %v839_v56, %v999_v10  ;;  %vm387_vm7 = vcmp.lt.s32.totalorder %v997_v7, 113  ;;  %vm431_vm8 = vcmp.lt.s32.totalorder %v997_v7, 111 }
   0xf   : > { %s246_s26 = scalar_lea.vmem %s1273_s1, %s849_s23  ;;  %v358_v57 = vcombine.low %v1063_v39, %v1066_v40 }
  0x10   : > { %v956_v0 = vld [vmem:[%s246_s26] sm:$0xff] }
  0x11   : > { %323 = vrot.lane.b32.xlu1 %v956_v0, %s895_s27  ;;  %279 = vrot.lane.b32.xlu0 %v956_v0, %s896_s28  ;;  %v964_v1 = vcombine.high %v956_v0, %v956_v0  ;;  %v360_v18 = vmul.f32 %v358_v57, %v956_v0 }
  0x15   : > { %256 = vrot.lane.b32.xlu0 %v956_v0, %s897_s29  ;;  %325 = vrot.lane.b32.xlu1 %v964_v1, %s895_s27 }
  0x19   : > { %258 = vrot.lane.b32.xlu1 %v964_v1, %s897_s29  ;;  %281 = vrot.lane.b32.xlu0 %v964_v1, %s896_s28 }
  0x1d   : > { %303 = vrot.lane.b32.xlu1 %v964_v1, %s898_s30  ;;  %301 = vrot.lane.b32.xlu0 %v956_v0, %s898_s30 }
  0x21   : > { %363 = vrot.lane.b32.xlu1 %v964_v1, %s899_s7  ;;  %361 = vrot.lane.b32.xlu0 %v956_v0, %s899_s7 }
  0x25   : > { %407 = vrot.lane.b32.xlu1 %v964_v1, %s900_s8  ;;  %405 = vrot.lane.b32.xlu0 %v956_v0, %s900_s8 }
  0x29   : > { %385 = vrot.lane.b32.xlu1 %v964_v1, %s902_s9  ;;  %383 = vrot.lane.b32.xlu0 %v956_v0, %s902_s9 }
  0x2d   : > { %429 = vrot.lane.b32.xlu1 %v964_v1, %s904_s10  ;;  %427 = vrot.lane.b32.xlu0 %v956_v0, %s904_s10 }
  0x31   : > { %489 = vperm.xlu0 %885, %v486_v4  }
  0x83   : > { %v324_v8 = vpop.permute.xlu1 %323  ;;  %v280_v9 = vpop.permute.xlu0 %279 }
  0x87   : > { %v257_v14 = vpop.permute.xlu0 %256  ;;  %v326_v15 = vpop.permute.xlu1 %325 }
  0x88   : > { %v328_v19 = vsel %vm327_vm0, %v324_v8, %v326_v15  ;;  %v329_v20 = vsel %vm327_vm0, %v326_v15, %v324_v8  ;;  %v1104_v8 = vrot.slane %v839_v56, %v1001_v11 }
  0x89   : > { %v343_v29 = vmul.f32 %v1011_v16, %v329_v20  ;;  %v344_v30 = vmul.f32 %v1014_v17, %v328_v19 }
  0x8b   : > { %v259_v26 = vpop.permute.xlu1 %258  ;;  %v282_v27 = vpop.permute.xlu0 %281  ;;  %v457_v46 = vrot.slane %v343_v29, 4  ;;  %v458_v47 = vrot.slane %v344_v30, 4  ;;  %v840_v29 = vld [vmem:[%s1272_s0 + $0x10] ss:$8 sm:$0x3] }
  0x8c   : > { %v284_v31 = vsel %vm283_vm1, %v280_v9, %v282_v27  ;;  %v285_v32 = vsel %vm283_vm1, %v282_v27, %v280_v9  ;;  %v263_v37 = vsel %vm262_vm2, %v257_v14, %v259_v26  ;;  %v264_v38 = vsel %vm262_vm2, %v259_v26, %v257_v14  ;;  %v838_v9 = vld [vmem:[%s1272_s0 + $0x6] ss:$8 sm:$0x3] }
  0x8d   : > { %v299_v33 = vmul.f32 %v1025_v21, %v285_v32  ;;  %v300_v34 = vmul.f32 %v1028_v22, %v284_v31  ;;  %v277_v50 = vmul.f32 %v1035_v24, %v264_v38  ;;  %v278_v51 = vmul.f32 %v1038_v25, %v263_v37 }
  0x8e   : > { %v1120_v27 = vrot.slane %v838_v9, %v999_v10  ;;  %v1123_v28 = vrot.slane %v838_v9, %v1001_v11 }
  0x8f   : > { %v451_v41 = vrot.slane %v299_v33, 4  ;;  %v452_v42 = vrot.slane %v300_v34, 4  ;;  %v304_v43 = vpop.permute.xlu1 %303  ;;  %v302_v44 = vpop.permute.xlu0 %301  ;;  %v462_v34 = vcombine.high %v360_v18, %v360_v18 }
  0x90   : > { %v306_v48 = vsel %vm305_vm3, %v302_v44, %v304_v43  ;;  %v307_v49 = vsel %vm305_vm3, %v304_v43, %v302_v44 }
  0x91   : > { %v321_v52 = vmul.f32 %v1053_v35, %v307_v49  ;;  %v322_v53 = vmul.f32 %v1056_v36, %v306_v48  ;;  %v478_v60 = vsel %vm476_vm4, %v278_v51, %v452_v42  ;;  %v477_v62 = vsel %vm476_vm4, %v277_v50, %v451_v41 }
  0x92   : > { %v1134_v41 = vrot.slane %v840_v29, %v1001_v11 }
  0x93   : > { %v364_v58 = vpop.permute.xlu1 %363  ;;  %v362_v59 = vpop.permute.xlu0 %361  ;;  %v480_v61 = vsel %vm476_vm4, %v322_v53, %v458_v47  ;;  %v479_v63 = vsel %vm476_vm4, %v321_v52, %v457_v46  ;;  %v1139_v46 = vrot.slane %v840_v29, %v999_v10 }
  0x94   : > { %v366_v2 = vsel %vm365_vm5, %v362_v59, %v364_v58  ;;  %v367_v3 = vsel %vm365_vm5, %v364_v58, %v362_v59  ;;  %v851_v4 = vpack.c.bf16 %v480_v61, %v478_v60  ;;  %v853_v5 = vpack.c.bf16 %v479_v63, %v477_v62  ;;  %v485_v59 = vld [vmem:[%s1274_s2] sm:$0xf] }
  0x95   : > { %v381_v12 = vmul.f32 %v1081_v54, %v366_v2  ;;  %v382_v13 = vmul.f32 %v1084_v55, %v367_v3 }
  0x96   : > { %852 = vmatprep.subr.bf16.mxu0 %v851_v4 }
  0x97   : > { %v408_v14 = vpop.permute.xlu1 %407  ;;  %854 = vmatpush1.bf16.msra.mxu0 %v853_v5  ;;  %v406_v15 = vpop.permute.xlu0 %405  ;;  %v466_v30 = vrot.slane %v381_v12, 4  ;;  %v467_v31 = vrot.slane %v382_v13, 4  ;;  %v674_v5 = vld [vmem:[%s1277_s5] sm:$0xf] }
  0x98   : > { %v410_v19 = vsel %vm409_vm6, %v406_v15, %v408_v14  ;;  %v411_v20 = vsel %vm409_vm6, %v408_v14, %v406_v15 }
  0x99   : > { %v425_v23 = vmul.f32 %v1101_v6, %v410_v19  ;;  %v426_v26 = vmul.f32 %v1104_v8, %v411_v20  ;;  %v482_v48 = vsel %vm476_vm4, %v462_v34, %v467_v31  ;;  %v481_v51 = vsel %vm476_vm4, %v360_v18, %v466_v30 }
  0x9b   : > { %v386_v32 = vpop.permute.xlu1 %385  ;;  %v384_v33 = vpop.permute.xlu0 %383  ;;  %v472_v42 = vrot.slane %v425_v23, 4  ;;  %v473_v43 = vrot.slane %v426_v26, 4 }
  0x9c   : > { %v388_v37 = vsel %vm387_vm7, %v384_v33, %v386_v32  ;;  %v389_v38 = vsel %vm387_vm7, %v386_v32, %v384_v33 }
  0x9d   : > { %v403_v44 = vmul.f32 %v1120_v27, %v388_v37  ;;  %v404_v45 = vmul.f32 %v1123_v28, %v389_v38 }
  0x9f   : > { %v430_v47 = vpop.permute.xlu1 %429  ;;  %v484_v49 = vsel %vm476_vm4, %v404_v45, %v473_v43  ;;  %v428_v50 = vpop.permute.xlu0 %427  ;;  %v483_v11 = vsel %vm476_vm4, %v403_v44, %v472_v42 }
  0xa0   : > { %v855_v52 = vpack.c.bf16 %v484_v49, %v482_v48  ;;  %v432_v53 = vsel %vm431_vm8, %v428_v50, %v430_v47  ;;  %v433_v56 = vsel %vm431_vm8, %v430_v47, %v428_v50  ;;  %v857_v57 = vpack.c.bf16 %v483_v11, %v481_v51 }
  0xa1   : > { %v448_v10 = vmul.f32 %v1134_v41, %v433_v56  ;;  %v447_v58 = vmul.f32 %v1139_v46, %v432_v53 }
  0xa2   : > { %856 = vmatprep.subr.bf16.mxu0 %v855_v52 }
  0xa3   : > { %858 = vmatpush1.bf16.msra.mxu0 %v857_v57 }
  0xa4   : > { %841 = vmatprep.subr.msk.mxu0 %vm476_vm4, %v448_v10 }
  0xa7   : > { %842 = vmatpush1.msk.msra.mxu0 %vm476_vm4, %v447_v58 }
  0xa8   : > { %843 = vmatmul.mubr.msk.f32.vlgmr.msra.gmra.mrb[0].mxu0 %vm492_vm9, %v485_v59 }
  0xb0   : > { %v490_v60 = vpop.permute.xlu0 %489 }
 0x17b   : > { %v568_v61 = vpop.f32.mrb[0].mxu0 }
 0x17c   : > { %v569_v62 = vadd.f32 %v568_v61, %v490_v60  ;;  %v570_v63 = vpop.f32.mrb[1].mxu0 }
 0x17d   : > { %v571_v3 = vadd.f32 %v570_v63, %v490_v60 }
 0x17e   : > { %v1157_v2 = vmax.f32 %v569_v62, 0.0 }
 0x17f   : > { %v1163_v4 = vmax.f32 %v571_v3, 0.0 }
 0x180   : > { %599 = vrot.lane.b32.xlu0 %v1157_v2, %s895_s27  ;;  %583 = vrot.lane.b32.xlu1 %v1157_v2, %s896_s28 }
 0x184   : > { %575 = vrot.lane.b32.xlu0 %v1157_v2, %s897_s29  ;;  %585 = vrot.lane.b32.xlu1 %v1163_v4, %s896_s28 }
 0x188   : > { %591 = vrot.lane.b32.xlu0 %v1157_v2, %s898_s30  ;;  %601 = vrot.lane.b32.xlu1 %v1163_v4, %s895_s27 }
 0x18c   : > { %609 = vrot.lane.b32.xlu0 %v1157_v2, %s899_s7  ;;  %577 = vrot.lane.b32.xlu1 %v1163_v4, %s897_s29 }
 0x190   : > { %625 = vrot.lane.b32.xlu0 %v1157_v2, %s900_s8  ;;  %593 = vrot.lane.b32.xlu1 %v1163_v4, %s898_s30 }
 0x194   : > { %617 = vrot.lane.b32.xlu0 %v1157_v2, %s902_s9  ;;  %611 = vrot.lane.b32.xlu1 %v1163_v4, %s899_s7 }
 0x198   : > { %633 = vrot.lane.b32.xlu0 %v1157_v2, %s904_s10  ;;  %627 = vrot.lane.b32.xlu1 %v1163_v4, %s900_s8 }
 0x19c   : > { %677 = vperm.xlu0 %885, %v674_v5   ;;  %619 = vrot.lane.b32.xlu1 %v1163_v4, %s902_s9  ;;  %s251_s9 = scalar_lea.vmem %s1278_s6, %s849_s23 }
 0x1a0   : > { %635 = vrot.lane.b32.xlu1 %v1163_v4, %s904_s10 }
 0x1f2   : > { %v600_v9 = vpop.permute.xlu0 %599  ;;  %v584_v12 = vpop.permute.xlu1 %583 }
 0x1f6   : > { %v576_v13 = vpop.permute.xlu0 %575  ;;  %v586_v14 = vpop.permute.xlu1 %585 }
 0x1f7   : > { %v587_v19 = vsel %vm283_vm1, %v584_v12, %v586_v14  ;;  %v588_v20 = vsel %vm283_vm1, %v586_v14, %v584_v12  ;;  %v608_v12 = vmul.f32 %v1163_v4, %v1066_v40 }
 0x1f8   : > { %v589_v30 = vmul.f32 %v588_v20, %v1025_v21  ;;  %v590_v31 = vmul.f32 %v587_v19, %v1028_v22 }
 0x1fa   : > { %v592_v15 = vpop.permute.xlu0 %591  ;;  %v602_v18 = vpop.permute.xlu1 %601  ;;  %v643_v45 = vrot.slane %v589_v30, 4  ;;  %v644_v21 = vrot.slane %v590_v31, 4  ;;  %v673_v30 = vld [vmem:[%s1276_s4] sm:$0xf] }
 0x1fb   : > { %v603_v23 = vsel %vm327_vm0, %v600_v9, %v602_v18  ;;  %v604_v26 = vsel %vm327_vm0, %v602_v18, %v600_v9 }
 0x1fc   : > { %v605_v34 = vmul.f32 %v604_v26, %v1011_v16  ;;  %v606_v37 = vmul.f32 %v603_v23, %v1014_v17 }
 0x1fe   : > { %v578_v29 = vpop.permute.xlu1 %577  ;;  %v610_v38 = vpop.permute.xlu0 %609  ;;  %v649_v48 = vrot.slane %v605_v34, 4  ;;  %v650_v49 = vrot.slane %v606_v37, 4 }
 0x1ff   : > { %v579_v32 = vsel %vm262_vm2, %v576_v13, %v578_v29  ;;  %v580_v33 = vsel %vm262_vm2, %v578_v29, %v576_v13  ;;  %v607_v13 = vmul.f32 %v1157_v2, %v1063_v39 }
 0x200   : > { %v581_v42 = vmul.f32 %v580_v33, %v1035_v24  ;;  %v582_v43 = vmul.f32 %v579_v32, %v1038_v25 }
 0x202   : > { %v594_v44 = vpop.permute.xlu1 %593  ;;  %v626_v50 = vpop.permute.xlu0 %625  ;;  %v666_v24 = vsel %vm476_vm4, %v582_v43, %v644_v21  ;;  %v665_v11 = vsel %vm476_vm4, %v581_v42, %v643_v45 }
 0x203   : > { %v595_v22 = vsel %vm305_vm3, %v592_v15, %v594_v44  ;;  %v596_v47 = vsel %vm305_vm3, %v594_v44, %v592_v15 }
 0x204   : > { %v597_v16 = vmul.f32 %v596_v47, %v1053_v35  ;;  %v598_v17 = vmul.f32 %v595_v22, %v1056_v36 }
 0x206   : > { %v612_v51 = vpop.permute.xlu1 %611  ;;  %v668_v25 = vsel %vm476_vm4, %v598_v17, %v650_v49  ;;  %v667_v52 = vsel %vm476_vm4, %v597_v16, %v649_v48  ;;  %v618_v61 = vpop.permute.xlu0 %617 }
 0x207   : > { %v613_v53 = vsel %vm365_vm5, %v610_v38, %v612_v51  ;;  %v614_v56 = vsel %vm365_vm5, %v612_v51, %v610_v38  ;;  %v859_v57 = vpack.c.bf16 %v668_v25, %v666_v24  ;;  %v861_v35 = vpack.c.bf16 %v667_v52, %v665_v11 }
 0x208   : > { %v615_v36 = vmul.f32 %v613_v53, %v1081_v54  ;;  %v616_v10 = vmul.f32 %v614_v56, %v1084_v55 }
 0x209   : > { %860 = vmatprep.subr.bf16.mxu1 %v859_v57 }
 0x20a   : > { %862 = vmatpush1.bf16.msra.mxu1 %v861_v35  ;;  %v628_v58 = vpop.permute.xlu1 %627  ;;  %v655_v3 = vrot.slane %v615_v36, 4  ;;  %v656_v5 = vrot.slane %v616_v10, 4  ;;  %v634_v18 = vpop.permute.xlu0 %633 }
 0x20b   : > { %v629_v59 = vsel %vm409_vm6, %v626_v50, %v628_v58  ;;  %v630_v60 = vsel %vm409_vm6, %v628_v58, %v626_v50 }
 0x20c   : > { %v631_v62 = vmul.f32 %v629_v59, %v1101_v6  ;;  %v632_v63 = vmul.f32 %v630_v60, %v1104_v8  ;;  %v670_v20 = vsel %vm476_vm4, %v608_v12, %v656_v5  ;;  %v669_v26 = vsel %vm476_vm4, %v607_v13, %v655_v3 }
 0x20e   : > { %v620_v9 = vpop.permute.xlu1 %619  ;;  %v661_v14 = vrot.slane %v631_v62, 4  ;;  %v662_v15 = vrot.slane %v632_v63, 4 }
 0x20f   : > { %v621_v54 = vsel %vm387_vm7, %v618_v61, %v620_v9  ;;  %v622_v55 = vsel %vm387_vm7, %v620_v9, %v618_v61 }
 0x210   : > { %v623_v6 = vmul.f32 %v621_v54, %v1120_v27  ;;  %v624_v8 = vmul.f32 %v622_v55, %v1123_v28 }
 0x212   : > { %v636_v19 = vpop.permute.xlu1 %635  ;;  %v672_v23 = vsel %vm476_vm4, %v624_v8, %v662_v15  ;;  %v671_v29 = vsel %vm476_vm4, %v623_v6, %v661_v14 }
 0x213   : > { %v638_v40 = vsel %vm431_vm8, %v636_v19, %v634_v18  ;;  %v863_v39 = vpack.c.bf16 %v672_v23, %v670_v20  ;;  %v865_v2 = vpack.c.bf16 %v671_v29, %v669_v26  ;;  %v637_v27 = vsel %vm431_vm8, %v634_v18, %v636_v19 }
 0x214   : > { %v640_v4 = vmul.f32 %v638_v40, %v1134_v41  ;;  %v639_v28 = vmul.f32 %v637_v27, %v1139_v46 }
 0x215   : > { %864 = vmatprep.subr.bf16.mxu1 %v863_v39 }
 0x216   : > { %866 = vmatpush1.bf16.msra.mxu1 %v865_v2 }
 0x217   : > { %844 = vmatprep.subr.msk.mxu1 %vm476_vm4, %v640_v4 }
 0x21a   : > { %845 = vmatpush1.msk.msra.mxu1 %vm476_vm4, %v639_v28 }
 0x21b   : > { %846 = vmatmul.mubr.msk.f32.vlgmr.msra.gmra.mrb[0].mxu1 %vm492_vm9, %v673_v30  ;;  %v678_v31 = vpop.permute.xlu0 %677 }
 0x2ee   : > { %v755_v41 = vpop.f32.mrb[0].mxu1 }
 0x2ef   : > { %v756_v32 = vadd.f32 %v755_v41, %v678_v31  ;;  %v757_v7 = vpop.f32.mrb[1].mxu1 }
 0x2f0   : > { %v758_v33 = vadd.f32 %v757_v7, %v678_v31 }
 0x2f1   : > { %v760_v34 = vadd.f32 %v756_v32, %v956_v0 }
 0x2f2   : > { %v761_v37 = vadd.f32 %v758_v33, %v964_v1 }
 0x2f3   : > { %v762_v38 = vmax.f32 %v760_v34, 0.0 }
 0x2f4   : > { %v763_v42 = vmax.f32 %v761_v37, 0.0 }
 0x2f6   : > { %v766_v46 = vcombine.low %v762_v38, %v763_v42 }
 0x2f8   : > { %768 = vst [vmem:[%s251_s9] sm:$0xff] %v766_v46 }
 0x2f9 PF: > { %s16_s21 = sadd.s32 1, %s893_s21  }
 0x2fa   : > { %p13_p4 = scmp.ge.s32.totalorder %s16_s21, 4  }
 0x2fc   :  { %15 = sbr.rel (!%p13_p4) target bundleno = 1 (0x1), region = 82 }

</bundles_post_ra>
